<compile_context>
chip_gen: v6e
topology: v6e:2x2x1
jax: 0.10.0
libtpu: 0.0.40
codegen_flags: <defaults>
</compile_context>

<pallas_src>
import functools
import math

import jax
import jax.numpy as jnp
from jax import lax
from jax.experimental import pallas as pl
from jax.experimental.pallas import tpu as pltpu

LANE = 128
SUBLANE = 8


def _round_up(n, m):
    return ((n + m - 1) // m) * m


def _get_act(activation):
    if activation == "tanh":
        return jnp.tanh
    if activation == "relu":
        return lambda v: jnp.maximum(v, 0.0)
    if activation is None:
        return lambda v: v
    raise ValueError(f"unsupported activation: {activation}")


# ----------------------------------------------------------------------------
# Kernel
# ----------------------------------------------------------------------------
def _mlp_kernel(*refs, num_hidden_layers, activation, input_is_scalar):
    """One batch tile of the full MLP forward.

    refs (has_hidden = num_hidden_layers > 1):
      x_ref     (TM, in)        f32
      w_in_ref  (in, Hp)        bf16
      b_in_ref  (1, Hp)         f32
      [w_h_ref  (L-1, Hp, Hp)   bf16]   only if has_hidden
      [b_h_ref  (L-1, 1, Hp)    f32 ]   only if has_hidden
      w_out_ref (Hp, Op)        bf16
      b_out_ref (1, Op)         f32
      o_ref     (TM, Op)        f32
    """
    has_hidden = num_hidden_layers > 1
    if has_hidden:
        (x_ref, w_in_ref, b_in_ref, w_h_ref, b_h_ref,
         w_out_ref, b_out_ref, o_ref) = refs
    else:
        (x_ref, w_in_ref, b_in_ref, w_out_ref, b_out_ref, o_ref) = refs
        w_h_ref = b_h_ref = None

    act = _get_act(activation)

    # --- first Linear (+ activation) ---
    if input_is_scalar:
        # K == 1 contraction -> VPU broadcast multiply, skip the MXU entirely.
        h = x_ref[...].astype(jnp.float32) * w_in_ref[...].astype(jnp.float32)
    else:
        h = jnp.dot(x_ref[...].astype(jnp.bfloat16), w_in_ref[...],
                    preferred_element_type=jnp.float32)
    h = act(h + b_in_ref[...])

    # --- hidden Linear layers (+ activation) ---
    if has_hidden:
        n_hidden = num_hidden_layers - 1

        def body(l, h_carry):
            hn = jnp.dot(h_carry.astype(jnp.bfloat16), w_h_ref[l],
                         preferred_element_type=jnp.float32)
            return act(hn + b_h_ref[l])

        h = lax.fori_loop(0, n_hidden, body, h, unroll=(n_hidden <= 4))

    # --- output Linear (no activation after it, matching the module) ---
    y = jnp.dot(h.astype(jnp.bfloat16), w_out_ref[...],
                preferred_element_type=jnp.float32)
    o_ref[...] = (y + b_out_ref[...]).astype(o_ref.dtype)


# ----------------------------------------------------------------------------
# Wrapper
# ----------------------------------------------------------------------------
def dynamic_network_forward(x, params, *, num_hidden_layers, activation="tanh",
                            block_m=512):
    """Runs the DynamicNetwork forward pass as a single Pallas kernel call."""
    w_in, b_in, w_h, b_h, w_out, b_out = params
    batch, in_features = x.shape
    hidden = w_in.shape[1]
    out_features = w_out.shape[1]

    hp = _round_up(hidden, LANE)          # lane-aligned hidden width
    op = _round_up(out_features, LANE)    # lane-dense output width
    bp8 = _round_up(batch, SUBLANE)
    tm = min(bp8, block_m)                # batch tile (rows per grid step)
    bpad = _round_up(bp8, tm)

    f32, bf16 = jnp.float32, jnp.bfloat16

    def pad2(a, rows, cols, dtype):
        a = a.astype(dtype)
        return jnp.pad(a, ((0, rows - a.shape[0]), (0, cols - a.shape[1])))

    # Zero padding is exact: tanh(0)=relu(0)=0 and padded weight rows are zero,
    # so padded lanes never contaminate real outputs.
    x_p = pad2(x, bpad, in_features, f32)
    w_in_p = pad2(w_in, in_features, hp, bf16)
    b_in_p = pad2(b_in, 1, hp, f32)
    w_out_p = pad2(w_out, hp, op, bf16)
    b_out_p = pad2(b_out, 1, op, f32)

    has_hidden = num_hidden_layers > 1
    args = [x_p, w_in_p, b_in_p]
    in_specs = [
        pl.BlockSpec((tm, in_features), lambda i: (i, 0)),   # x: tiled over batch
        pl.BlockSpec((in_features, hp), lambda i: (0, 0)),   # weights resident
        pl.BlockSpec((1, hp), lambda i: (0, 0)),
    ]
    if has_hidden:
        lm1 = num_hidden_layers - 1
        w_h_p = jnp.pad(w_h.astype(bf16),
                        ((0, 0), (0, hp - w_h.shape[1]), (0, hp - w_h.shape[2])))
        b_h_p = jnp.pad(b_h.astype(f32),
                        ((0, 0), (0, 0), (0, hp - b_h.shape[2])))
        args += [w_h_p, b_h_p]
        in_specs += [
            pl.BlockSpec((lm1, hp, hp), lambda i: (0, 0, 0)),
            pl.BlockSpec((lm1, 1, hp), lambda i: (0, 0, 0)),
        ]
    args += [w_out_p, b_out_p]
    in_specs += [
        pl.BlockSpec((hp, op), lambda i: (0, 0)),
        pl.BlockSpec((1, op), lambda i: (0, 0)),
    ]
    out_spec = pl.BlockSpec((tm, op), lambda i: (i, 0))

    kernel = functools.partial(
        _mlp_kernel,
        num_hidden_layers=num_hidden_layers,
        activation=activation,
        input_is_scalar=(in_features == 1),
    )

    # Raise the scoped VMEM limit only when the resident weight stack needs it.
    resident_bytes = sum(int(a.size) * a.dtype.itemsize for a in args[1:])
    tile_bytes = 2 * (tm * in_features * 4 + tm * op * 4)  # double-buffered x/out
    est = 2 * resident_bytes + tile_bytes + (2 << 20)
    vmem_limit = int(min(est, 100 * 1024 * 1024)) if est > (32 << 20) else None

    out_padded = pl.pallas_call(
        kernel,
        out_shape=jax.ShapeDtypeStruct((bpad, op), jnp.float32),
        grid_spec=pltpu.PrefetchScalarGridSpec(
            num_scalar_prefetch=0,
            grid=(bpad // tm,),
            in_specs=in_specs,
            out_specs=out_spec,
        ),
        compiler_params=pltpu.CompilerParams(
            dimension_semantics=("parallel",),
            vmem_limit_bytes=vmem_limit,
        ),
    )(*args)

    return out_padded[:batch, :out_features]


# ----------------------------------------------------------------------------
# Deterministic parameter init (mimics nn.Linear's U(-1/sqrt(fan_in), +...))
# Weights stored as (in_features, out_features), i.e. transposed vs torch.
# ----------------------------------------------------------------------------
def init_params(key, input_size, hidden_size, output_size, num_hidden_layers):
    n_linear = 2 + max(num_hidden_layers - 1, 0)
    keys = jax.random.split(key, n_linear)

    def linear(k, fan_in, fan_out):
        bound = 1.0 / math.sqrt(fan_in)
        kw, kb = jax.random.split(k)
        w = jax.random.uniform(kw, (fan_in, fan_out), jnp.float32, -bound, bound)
        b = jax.random.uniform(kb, (1, fan_out), jnp.float32, -bound, bound)
        return w, b

    w_in, b_in = linear(keys[0], input_size, hidden_size)

    if num_hidden_layers > 1:
        whs, bhs = [], []
        for i in range(num_hidden_layers - 1):
            w, b = linear(keys[1 + i], hidden_size, hidden_size)
            whs.append(w)
            bhs.append(b)
        w_h = jnp.stack(whs, axis=0)       # (L-1, H, H)
        b_h = jnp.stack(bhs, axis=0)       # (L-1, 1, H)
    else:
        w_h = b_h = None                   # no dummy buffers DMA'd for L == 1

    w_out, b_out = linear(keys[-1], hidden_size, output_size)
    return (w_in, b_in, w_h, b_h, w_out, b_out)


# ----------------------------------------------------------------------------
# Pure-JAX f32 reference (mirrors the nn.Sequential forward)
# ----------------------------------------------------------------------------
def reference_forward(x, params, *, num_hidden_layers, activation="tanh"):
    w_in, b_in, w_h, b_h, w_out, b_out = params
    act = _get_act(activation)
    h = act(x @ w_in + b_in)
    for l in range(num_hidden_layers - 1):
        h = act(h @ w_h[l] + b_h[l])
    return h @ w_out + b_out


# ----------------------------------------------------------------------------
if __name__ == "__main__":
    # Module-consistent small shapes:
    #   input_size=1, hidden_size=32, num_hidden_layers=3, output_size=1
    batch = 8
    input_size = 1
    hidden_size = 32
    output_size = 1
    num_hidden_layers = 3
    activation = "tanh"   # corresponds to passing nn.Tanh as activation_fn

    key = jax.random.PRNGKey(0)
    kx, kp = jax.random.split(key)
    x = jax.random.normal(kx, (batch, input_size), jnp.float32)
    params = init_params(kp, input_size, hidden_size, output_size,
                         num_hidden_layers)

    out = dynamic_network_forward(x, params,
                                  num_hidden_layers=num_hidden_layers,
                                  activation=activation)
    out = jax.block_until_ready(out)

    ref = reference_forward(x, params,
                            num_hidden_layers=num_hidden_layers,
                            activation=activation)
    assert out.shape == (batch, output_size)
    # bf16 weights / activations on the MXU with f32 accumulation -> loose tol.
    assert jnp.allclose(out, ref, atol=2e-2, rtol=2e-2), "mismatch vs reference"

    print("KERNEL_OK")
</pallas_src>

<mosaic_0001>
module attributes {stable_mosaic.version = 11 : i64} {
  func.func @_mlp_kernel(%arg0: i32, %arg1: memref<8x1xf32, #tpu.memory_space<vmem>>, %arg2: memref<1x128xbf16, #tpu.memory_space<vmem>>, %arg3: memref<1x128xf32, #tpu.memory_space<vmem>>, %arg4: memref<2x128x128xbf16, #tpu.memory_space<vmem>>, %arg5: memref<2x1x128xf32, #tpu.memory_space<vmem>>, %arg6: memref<128x128xbf16, #tpu.memory_space<vmem>>, %arg7: memref<1x128xf32, #tpu.memory_space<vmem>>, %arg8: memref<8x128xf32, #tpu.memory_space<vmem>>) attributes {dimension_semantics = [#tpu.dimension_semantics<parallel>], iteration_bounds = array<i64: 1>, scalar_prefetch = 0 : i64, scratch_operands = 0 : i64, tpu.core_type = #tpu.core_type<tc>, window_params = [{transform_indices = @transform_0, window_bounds = array<i64: 8, 1>}, {pipeline_mode = #tpu.pipeline_mode<synchronous>, transform_indices = @transform_1, window_bounds = array<i64: 1, 128>}, {pipeline_mode = #tpu.pipeline_mode<synchronous>, transform_indices = @transform_2, window_bounds = array<i64: 1, 128>}, {pipeline_mode = #tpu.pipeline_mode<synchronous>, transform_indices = @transform_3, window_bounds = array<i64: 2, 128, 128>}, {pipeline_mode = #tpu.pipeline_mode<synchronous>, transform_indices = @transform_4, window_bounds = array<i64: 2, 1, 128>}, {pipeline_mode = #tpu.pipeline_mode<synchronous>, transform_indices = @transform_5, window_bounds = array<i64: 128, 128>}, {pipeline_mode = #tpu.pipeline_mode<synchronous>, transform_indices = @transform_6, window_bounds = array<i64: 1, 128>}, {transform_indices = @transform_7, window_bounds = array<i64: 8, 128>}]} {
    %c0 = arith.constant 0 : index
    %c0_0 = arith.constant 0 : index
    %0 = vector.load %arg1[%c0, %c0_0] : memref<8x1xf32, #tpu.memory_space<vmem>>, vector<8x1xf32>
    %c0_1 = arith.constant 0 : index
    %c0_2 = arith.constant 0 : index
    %1 = vector.load %arg2[%c0_1, %c0_2] : memref<1x128xbf16, #tpu.memory_space<vmem>>, vector<1x128xbf16>
    %2 = arith.extf %1 : vector<1x128xbf16> to vector<1x128xf32>
    %3 = vector.broadcast %0 : vector<8x1xf32> to vector<8x128xf32>
    %4 = vector.broadcast %2 : vector<1x128xf32> to vector<8x128xf32>
    %5 = arith.mulf %3, %4 : vector<8x128xf32>
    %c0_3 = arith.constant 0 : index
    %c0_4 = arith.constant 0 : index
    %6 = vector.load %arg3[%c0_3, %c0_4] : memref<1x128xf32, #tpu.memory_space<vmem>>, vector<1x128xf32>
    %7 = vector.broadcast %6 : vector<1x128xf32> to vector<8x128xf32>
    %8 = arith.addf %5, %7 : vector<8x128xf32>
    %9 = math.tanh %8 : vector<8x128xf32>
    %c0_i32 = arith.constant 0 : i32
    %10 = arith.truncf %9 : vector<8x128xf32> to vector<8x128xbf16>
    %11 = arith.index_cast %c0_i32 : i32 to index
    %c0_5 = arith.constant 0 : index
    %c0_6 = arith.constant 0 : index
    %12 = vector.load %arg4[%11, %c0_5, %c0_6] : memref<2x128x128xbf16, #tpu.memory_space<vmem>>, vector<1x128x128xbf16>
    %13 = vector.shape_cast %12 : vector<1x128x128xbf16> to vector<128x128xbf16>
    %cst = arith.constant dense<0.000000e+00> : vector<8x128xf32>
    %14 = tpu.matmul %10, %13, %cst {dimension_numbers = #tpu.dot_dimension_numbers<[1], [0], [0], [1], [0, 0, 1, 1], [], []>} : vector<8x128xbf16>, vector<128x128xbf16>, vector<8x128xf32> -> vector<8x128xf32>
    %15 = arith.index_cast %c0_i32 : i32 to index
    %c0_7 = arith.constant 0 : index
    %c0_8 = arith.constant 0 : index
    %16 = vector.load %arg5[%15, %c0_7, %c0_8] : memref<2x1x128xf32, #tpu.memory_space<vmem>>, vector<1x1x128xf32>
    %17 = vector.shape_cast %16 : vector<1x1x128xf32> to vector<1x128xf32>
    %18 = vector.broadcast %17 : vector<1x128xf32> to vector<8x128xf32>
    %19 = arith.addf %14, %18 : vector<8x128xf32>
    %20 = math.tanh %19 : vector<8x128xf32>
    %c1_i32 = arith.constant 1 : i32
    %21 = arith.truncf %20 : vector<8x128xf32> to vector<8x128xbf16>
    %22 = arith.index_cast %c1_i32 : i32 to index
    %c0_9 = arith.constant 0 : index
    %c0_10 = arith.constant 0 : index
    %23 = vector.load %arg4[%22, %c0_9, %c0_10] : memref<2x128x128xbf16, #tpu.memory_space<vmem>>, vector<1x128x128xbf16>
    %24 = vector.shape_cast %23 : vector<1x128x128xbf16> to vector<128x128xbf16>
    %cst_11 = arith.constant dense<0.000000e+00> : vector<8x128xf32>
    %25 = tpu.matmul %21, %24, %cst_11 {dimension_numbers = #tpu.dot_dimension_numbers<[1], [0], [0], [1], [0, 0, 1, 1], [], []>} : vector<8x128xbf16>, vector<128x128xbf16>, vector<8x128xf32> -> vector<8x128xf32>
    %26 = arith.index_cast %c1_i32 : i32 to index
    %c0_12 = arith.constant 0 : index
    %c0_13 = arith.constant 0 : index
    %27 = vector.load %arg5[%26, %c0_12, %c0_13] : memref<2x1x128xf32, #tpu.memory_space<vmem>>, vector<1x1x128xf32>
    %28 = vector.shape_cast %27 : vector<1x1x128xf32> to vector<1x128xf32>
    %29 = vector.broadcast %28 : vector<1x128xf32> to vector<8x128xf32>
    %30 = arith.addf %25, %29 : vector<8x128xf32>
    %31 = math.tanh %30 : vector<8x128xf32>
    %c2_i32 = arith.constant 2 : i32
    %32 = arith.truncf %31 : vector<8x128xf32> to vector<8x128xbf16>
    %c0_14 = arith.constant 0 : index
    %c0_15 = arith.constant 0 : index
    %33 = vector.load %arg6[%c0_14, %c0_15] : memref<128x128xbf16, #tpu.memory_space<vmem>>, vector<128x128xbf16>
    %cst_16 = arith.constant dense<0.000000e+00> : vector<8x128xf32>
    %34 = tpu.matmul %32, %33, %cst_16 {dimension_numbers = #tpu.dot_dimension_numbers<[1], [0], [0], [1], [0, 0, 1, 1], [], []>} : vector<8x128xbf16>, vector<128x128xbf16>, vector<8x128xf32> -> vector<8x128xf32>
    %c0_17 = arith.constant 0 : index
    %c0_18 = arith.constant 0 : index
    %35 = vector.load %arg7[%c0_17, %c0_18] : memref<1x128xf32, #tpu.memory_space<vmem>>, vector<1x128xf32>
    %36 = vector.broadcast %35 : vector<1x128xf32> to vector<8x128xf32>
    %37 = arith.addf %34, %36 : vector<8x128xf32>
    %c0_19 = arith.constant 0 : index
    %c0_20 = arith.constant 0 : index
    %38 = vector.load %arg8[%c0_19, %c0_20] : memref<8x128xf32, #tpu.memory_space<vmem>>, vector<8x128xf32>
    tpu.vector_store %arg8[%c0_19, %c0_20], %37 {strides = array<i32>} : memref<8x128xf32, #tpu.memory_space<vmem>>, vector<8x128xf32>,
    return
  }
  func.func @transform_0(%arg0: i32) -> (i32, i32) {
    %c0_i32 = arith.constant 0 : i32
    %c0_i32_0 = arith.constant 0 : i32
    return %arg0, %c0_i32 : i32, i32
  }
  func.func @transform_1(%arg0: i32) -> (i32, i32) {
    %c0_i32 = arith.constant 0 : i32
    %c0_i32_0 = arith.constant 0 : i32
    %c0_i32_1 = arith.constant 0 : i32
    return %c0_i32, %c0_i32_0 : i32, i32
  }
  func.func @transform_2(%arg0: i32) -> (i32, i32) {
    %c0_i32 = arith.constant 0 : i32
    %c0_i32_0 = arith.constant 0 : i32
    %c0_i32_1 = arith.constant 0 : i32
    return %c0_i32, %c0_i32_0 : i32, i32
  }
  func.func @transform_3(%arg0: i32) -> (i32, i32, i32) {
    %c0_i32 = arith.constant 0 : i32
    %c0_i32_0 = arith.constant 0 : i32
    %c0_i32_1 = arith.constant 0 : i32
    %c0_i32_2 = arith.constant 0 : i32
    return %c0_i32, %c0_i32_0, %c0_i32_1 : i32, i32, i32
  }
  func.func @transform_4(%arg0: i32) -> (i32, i32, i32) {
    %c0_i32 = arith.constant 0 : i32
    %c0_i32_0 = arith.constant 0 : i32
    %c0_i32_1 = arith.constant 0 : i32
    %c0_i32_2 = arith.constant 0 : i32
    return %c0_i32, %c0_i32_0, %c0_i32_1 : i32, i32, i32
  }
  func.func @transform_5(%arg0: i32) -> (i32, i32) {
    %c0_i32 = arith.constant 0 : i32
    %c0_i32_0 = arith.constant 0 : i32
    %c0_i32_1 = arith.constant 0 : i32
    return %c0_i32, %c0_i32_0 : i32, i32
  }
  func.func @transform_6(%arg0: i32) -> (i32, i32) {
    %c0_i32 = arith.constant 0 : i32
    %c0_i32_0 = arith.constant 0 : i32
    %c0_i32_1 = arith.constant 0 : i32
    return %c0_i32, %c0_i32_0 : i32, i32
  }
  func.func @transform_7(%arg0: i32) -> (i32, i32) {
    %c0_i32 = arith.constant 0 : i32
    %c0_i32_0 = arith.constant 0 : i32
    return %arg0, %c0_i32 : i32, i32
  }
}

</mosaic_0001>

<bundles_post_ra>
// kernel: tpu_custom_call.1
= control target key start
LH: loop header
LB: loop body
LE: loop exit
PB: predicated region body
PF: predicated region fallthrough
CT: control target
= control target key end

     0   :  { %12 = vsyncpa [#allocation3], 0  ;;  %s761_s0 = inlined_call_operand.vmem [shape: f32[8,1], index: 0, kind: input, shape index: {}]   ;;  %s762_s1 = inlined_call_operand.vmem [shape: bf16[1,128], index: 1, kind: input, shape index: {}]   ;;  %s763_s2 = inlined_call_operand.vmem [shape: f32[1,128], index: 2, kind: input, shape index: {}]   ;;  %s764_s3 = inlined_call_operand.hbm [shape: bf16[2,128,128], index: 3, kind: input, shape index: {}]   ;;  %s765_s4 = inlined_call_operand.vmem [shape: f32[2,1,128], index: 4, kind: input, shape index: {}]   ;;  %s766_s5 = inlined_call_operand.hbm [shape: bf16[128,128], index: 5, kind: input, shape index: {}]   ;;  %s767_s6 = inlined_call_operand.vmem [shape: f32[1,128], index: 6, kind: input, shape index: {}]   ;;  %s768_s7 = inlined_call_operand.hbm [shape: f32[8,128], index: 7, kind: output, shape index: {}]  }
   0x1   :  { %13 = vsyncpa [#allocation6], 0 }
   0x2   :  { %14 = vsyncpa [#allocation4], 0  ;;  %s656_s24 = smov [#allocation2]  }
   0x3   :  { %s26_s25 = sshll.u32 %s656_s24, 4  ;;  %s27_s25 = int_to_ptr.vmem [resolvable:$true] %s26_s25 }
   0x4   :  { %s598_s26 = scalar_lea.vmem %s27_s25, 2048  ;;  %p603_p1 = scmp.lt.s32.totalorder %s27_s25, %s27_s25 }
   0x5   :  { %p599_p0 = scmp.ne.s32.totalorder %s27_s25, %s598_s26  ;;  %p604_p2 = scmp.lt.s32.totalorder %s598_s26, %s598_s26 }
   0x7   :  { %p605_p3 = por %p604_p2, %p603_p1 }
   0x9   :  { %p606_p4 = pnand %p605_p3, %p599_p0 }
   0xb   :  { %609 = shalt.err (!%p606_p4)
}
   0xc   :  { %s657_s27 = smov 64   ;;  %s658_s28 = smov 4  }
   0xd   :  { %32 = dma.hbm_to_vmem [thread:$0]  %s764_s3, 2048, %s27_s25, [#allocation3], %s657_s27, %s657_s27, %s658_s28  }
   0xe   :  { %s659_s8 = smov [#allocation5]  }
   0xf   :  { %s40_s9 = sshll.u32 %s659_s8, 4  ;;  %s41_s9 = int_to_ptr.vmem [resolvable:$true] %s40_s9 }
  0x10   :  { %s618_s10 = scalar_lea.vmem %s41_s9, 1024  ;;  %p623_p6 = scmp.lt.s32.totalorder %s41_s9, %s41_s9 }
  0x11   :  { %p619_p5 = scmp.ne.s32.totalorder %s41_s9, %s618_s10  ;;  %p624_p7 = scmp.lt.s32.totalorder %s618_s10, %s618_s10 }
  0x13   :  { %p625_p8 = por %p624_p7, %p623_p6 }
  0x15   :  { %p626_p9 = pnand %p625_p8, %p619_p5 }
  0x17   :  { %629 = shalt.err (!%p626_p9)
}
  0x18   :  { %46 = dma.hbm_to_vmem [thread:$0]  %s766_s5, 1024, %s41_s9, [#allocation6], %s657_s27, %s657_s27, %s658_s28  }
  0x19   :  { %650 = dma.done.wait [#allocation3], 2048  }
  0x1a   :  { %651 = vsyncadd [#allocation3], 4294965248 }
  0x1b   :  { %652 = dma.done.wait [#allocation6], 1024  }
  0x1c   :  { %653 = vsyncadd [#allocation6], 4294966272  ;;  %v660_v0 = vmov 0   ;;  %v661_v1 = vmov 0.0   ;;  %v56_v2 = vld [vmem:[%s761_s0] sm:$0xff]  ;;  %v560_v3 = vld [vmem:[#allocation2 + $0x38] sm:$0xff]   ;;  %v64_v14 = vlaneseq }
  0x1d   :  { %559 = vset.pattern.permute.xlu0 %v660_v0  ;;  %491 = vmatprep.subr.bf16.mxu0 %v661_v1  ;;  %vm662_vm0 = vmmov 0   ;;  %v561_v4 = vld [vmem:[#allocation2 + $0x30] sm:$0xff]   ;;  %v562_v5 = vld [vmem:[#allocation2 + $0x28] sm:$0xff]   ;;  %v563_v6 = vld [vmem:[#allocation2 + $0x20] sm:$0xff]   ;;  %s663_s20 = smov [#allocation7]  }
  0x1e   :  { %511 = vmatprep.subr.bf16.mxu1 %v661_v1  ;;  %61 = vperm.xlu0 %559, %v56_v2   ;;  %v564_v7 = vld [vmem:[#allocation2 + $0x18] sm:$0xff]   ;;  %v565_v8 = vld [vmem:[#allocation2 + $0x10] sm:$0xff]   ;;  %v566_v11 = vld [vmem:[#allocation2 + $0x8] sm:$0xff]   ;;  %v65_v15 = vshrl.u32 %v64_v14, 7  ;;  %s425_s21 = sshll.u32 %s663_s20, 4  ;;  %s426_s21 = int_to_ptr.vmem [resolvable:$true] %s425_s21 }
  0x1f   :  { %507 = vmatprep.mubr.msk.bf16.mxu0 %vm662_vm0, %v661_v1  ;;  %527 = vmatprep.mubr.msk.bf16.mxu1 %vm662_vm0, %v661_v1  ;;  %v568_v9 = vld [vmem:[#allocation2 + $0x78] sm:$0xff]   ;;  %v569_v10 = vld [vmem:[#allocation2 + $0x70] sm:$0xff]   ;;  %v570_v12 = vld [vmem:[#allocation2 + $0x68] sm:$0xff]   ;;  %p635_p11 = scmp.lt.s32.totalorder %s426_s21, %s426_s21 }
  0x20   :  { %492 = vmatpush3.bf16.msra.mxu0 %v560_v3  ;;  %512 = vmatpush3.bf16.msra.mxu1 %v568_v9  ;;  %v567_v13 = vld [vmem:[#allocation2] sm:$0xff]   ;;  %v66_v18 = vsub.s32 0, %v65_v15  ;;  %v572_v27 = vld [vmem:[#allocation2 + $0x58] sm:$0xff]   ;;  %v573_v28 = vld [vmem:[#allocation2 + $0x50] sm:$0xff]  }
  0x21   :  { %493 = vmatprep.subr.bf16.mxu0 %v661_v1  ;;  %513 = vmatprep.subr.bf16.mxu1 %v661_v1  ;;  %v57_v16 = vld [vmem:[%s762_s1] sm:$0x1]  ;;  %v574_v29 = vld [vmem:[#allocation2 + $0x48] sm:$0xff]   ;;  %v576_v31 = vld [vmem:[#allocation5 + $0x38] sm:$0xff]  }
  0x22   :  { %v58_v17 = vunpack.c.l.bf16 %v57_v16  ;;  %v435_v20 = vld [vmem:[%s763_s2] ss:$0 sm:$0xff]  ;;  %v577_v32 = vld [vmem:[#allocation5 + $0x30] sm:$0xff]   ;;  %v578_v33 = vld [vmem:[#allocation5 + $0x28] sm:$0xff]  }
  0x23   :  { %v571_v26 = vld [vmem:[#allocation2 + $0x60] sm:$0xff]   ;;  %v580_v43 = vld [vmem:[#allocation5 + $0x18] sm:$0xff]   ;;  %v581_v44 = vld [vmem:[#allocation5 + $0x10] sm:$0xff]  }
  0x24   :  { %494 = vmatpush3.bf16.msra.mxu0 %v561_v4  ;;  %514 = vmatpush3.bf16.msra.mxu1 %v569_v10  ;;  %v67_v19 = vrot.slane %v58_v17, %v66_v18  ;;  %v575_v30 = vld [vmem:[#allocation2 + $0x40] sm:$0xff]   ;;  %v582_v45 = vld [vmem:[#allocation5 + $0x8] sm:$0xff]  }
  0x25   :  { %495 = vmatprep.subr.bf16.mxu0 %v661_v1  ;;  %515 = vmatprep.subr.bf16.mxu1 %v661_v1  ;;  %v436_v34 = vld [vmem:[%s765_s4] ss:$0 sm:$0xff]  ;;  %v446_v47 = vld [vmem:[%s765_s4 + $0x1] ss:$0 sm:$0xff]  ;;  %s630_s4 = scalar_lea.vmem %s426_s21, 128 }
  0x26   :  { %v579_v42 = vld [vmem:[#allocation5 + $0x20] sm:$0xff]   ;;  %p631_p10 = scmp.ne.s32.totalorder %s426_s21, %s630_s4  ;;  %p636_p12 = scmp.lt.s32.totalorder %s630_s4, %s630_s4 }
  0x27   :  { %v583_v46 = vld [vmem:[#allocation5] sm:$0xff]  }
  0x28   :  { %496 = vmatpush3.bf16.msra.mxu0 %v562_v5  ;;  %516 = vmatpush3.bf16.msra.mxu1 %v570_v12  ;;  %v455_v55 = vld [vmem:[%s767_s6] ss:$0 sm:$0xff]  ;;  %p637_p13 = por %p636_p12, %p635_p11 }
  0x29   :  { %497 = vmatprep.subr.bf16.mxu0 %v661_v1  ;;  %517 = vmatprep.subr.bf16.mxu1 %v661_v1 }
  0x2a   :  { %p638_p0 = pnand %p637_p13, %p631_p10 }
  0x2c   :  { %498 = vmatpush3.bf16.msra.mxu0 %v563_v6  ;;  %518 = vmatpush3.bf16.msra.mxu1 %v571_v26 }
  0x2d   :  { %499 = vmatprep.subr.bf16.mxu0 %v661_v1  ;;  %519 = vmatprep.subr.bf16.mxu1 %v661_v1 }
  0x30   :  { %500 = vmatpush3.bf16.msra.mxu0 %v564_v7  ;;  %520 = vmatpush3.bf16.msra.mxu1 %v572_v27 }
  0x31   :  { %501 = vmatprep.subr.bf16.mxu0 %v661_v1  ;;  %521 = vmatprep.subr.bf16.mxu1 %v661_v1 }
  0x34   :  { %502 = vmatpush3.bf16.msra.mxu0 %v565_v8  ;;  %522 = vmatpush3.bf16.msra.mxu1 %v573_v28 }
  0x35   :  { %503 = vmatprep.subr.bf16.mxu0 %v661_v1  ;;  %523 = vmatprep.subr.bf16.mxu1 %v661_v1 }
  0x38   :  { %504 = vmatpush3.bf16.msra.mxu0 %v566_v11  ;;  %524 = vmatpush3.bf16.msra.mxu1 %v574_v29 }
  0x39   :  { %505 = vmatprep.subr.bf16.mxu0 %v661_v1  ;;  %525 = vmatprep.subr.bf16.mxu1 %v661_v1 }
  0x3c   :  { %506 = vmatpush3.bf16.msra.mxu0 %v567_v13  ;;  %526 = vmatpush3.bf16.msra.mxu1 %v575_v30 }
  0x3d   :  { %531 = vmatprep.subr.bf16.mxu0 %v661_v1 }
  0x99   :  { %v62_v21 = vpop.permute.xlu0 %61 }
  0x9a   :  { %v68_v22 = vmul.f32 %v67_v19, %v62_v21 }
  0x9c   :  { %v76_v23 = vadd.f32 %v435_v20, %v68_v22 }
  0x9e   :  { %584 = vtanh.f32 %v76_v23 }
  0xab   :  { %v585_v24 = vpop.eup %584 }
  0xac   :  { %v78_v25 = vpack.c.bf16 %v585_v24, %v585_v24 }
  0xae   :  { %508 = vmatmul.mubr.bf16.vlgmr.msra.gmra.mxu0 %v78_v25 }
  0xaf   :  { %547 = vmatprep.mubr.msk.bf16.mxu0 %vm662_vm0, %v661_v1  ;;  %532 = vmatpush3.bf16.msra.mxu0 %v576_v31 }
  0xb0   :  { %533 = vmatprep.subr.bf16.mxu0 %v661_v1 }
  0xb3   :  { %534 = vmatpush3.bf16.msra.mxu0 %v577_v32 }
  0xb4   :  { %535 = vmatprep.subr.bf16.mxu0 %v661_v1 }
  0xb7   :  { %536 = vmatpush3.bf16.msra.mxu0 %v578_v33 }
  0xb8   :  { %537 = vmatprep.subr.bf16.mxu0 %v661_v1 }
  0xbb   :  { %538 = vmatpush3.bf16.msra.mxu0 %v579_v42 }
  0xbc   :  { %539 = vmatprep.subr.bf16.mxu0 %v661_v1 }
  0xbf   :  { %540 = vmatpush3.bf16.msra.mxu0 %v580_v43 }
  0xc0   :  { %541 = vmatprep.subr.bf16.mxu0 %v661_v1 }
  0xc3   :  { %542 = vmatpush3.bf16.msra.mxu0 %v581_v44 }
  0xc4   :  { %543 = vmatprep.subr.bf16.mxu0 %v661_v1 }
  0xc7   :  { %544 = vmatpush3.bf16.msra.mxu0 %v582_v45 }
  0xc8   :  { %545 = vmatprep.subr.bf16.mxu0 %v661_v1 }
  0xcb   :  { %546 = vmatpush3.bf16.msra.mxu0 %v583_v46 }
 0x16e   :  { %v184_v35 = vpop.f32.mrf.mxu0 }
 0x16f   :  { %v185_v36 = vadd.f32 %v436_v34, %v184_v35 }
 0x170   :  { %v509_v37 = vpop.f32.mrf.mxu0 }
 0x171   :  { %586 = vtanh.f32 %v185_v36 }
 0x172   :  { %v187_v38 = vpop.f32.mrf.mxu0 }
 0x174   :  { %v510_v39 = vpop.f32.mrf.mxu0 }
 0x17e   :  { %v587_v40 = vpop.eup %586 }
 0x17f   :  { %v191_v41 = vpack.c.bf16 %v587_v40, %v587_v40 }
 0x181   :  { %528 = vmatmul.mubr.bf16.vlgmr.msra.gmra.mxu1 %v191_v41 }
 0x241   :  { %v299_v48 = vpop.f32.mrf.mxu1 }
 0x242   :  { %v300_v49 = vadd.f32 %v446_v47, %v299_v48 }
 0x243   :  { %v529_v50 = vpop.f32.mrf.mxu1 }
 0x244   :  { %588 = vtanh.f32 %v300_v49 }
 0x245   :  { %v302_v51 = vpop.f32.mrf.mxu1 }
 0x247   :  { %v530_v52 = vpop.f32.mrf.mxu1 }
 0x251   :  { %v589_v53 = vpop.eup %588 }
 0x252   :  { %v306_v54 = vpack.c.bf16 %v589_v53, %v589_v53 }
 0x254   :  { %548 = vmatmul.mubr.bf16.vlgmr.msra.gmra.mxu0 %v306_v54 }
 0x314   :  { %v412_v56 = vpop.f32.mrf.mxu0 }
 0x315   :  { %v413_v57 = vadd.f32 %v455_v55, %v412_v56 }
 0x316   :  { %v549_v58 = vpop.f32.mrf.mxu0 }
 0x317   :  { %418 = vst [vmem:[#allocation7] sm:$0xff] %v413_v57 }
 0x318   :  { %v415_v59 = vpop.f32.mrf.mxu0 }
 0x319   :  { %641 = shalt.err (!%p638_p0)
}
 0x31a   :  { %428 = dma.vmem_to_hbm [thread:$0]  %s426_s21, 128, %s768_s7, [#allocation4]   ;;  %v550_v60 = vpop.f32.mrf.mxu0 }
 0x31b   :  { %654 = dma.done.wait [#allocation4], 128  }
 0x31c   :  { %655 = vsyncadd [#allocation4], 4294967168 }
 0x31d   :  { %432 = vsyncpa [#allocation3], 1 }
 0x31e   :  { %433 = vsyncpa [#allocation6], 1 }
 0x31f   :  { %434 = vsyncpa [#allocation4], 1 }

</bundles_post_ra>
